<compile_context>
chip_gen: v7x
topology: tpu7x:2x2x1
jax: 0.10.0
libtpu: 0.0.40
codegen_flags: <defaults>
</compile_context>

<pallas_src>
import jax
import jax.numpy as jnp
from jax import lax
from jax.experimental import pallas as pl
from jax.experimental.pallas import tpu as pltpu

_LANE = 128          # vreg lane width
_NEG_BIG = -1e30     # "minus infinity" bias for padded vocab lanes


# ----------------------------------------------------------------------------
# Setup-time parameter padding (layout plumbing, done once):
# pad vocab dim to a 128-lane multiple and pre-cast W to bf16 for the MXU.
# ----------------------------------------------------------------------------
def pad_vocab_params(W, b, pos, lane=_LANE):
    V = W.shape[1]
    Vp = ((V + lane - 1) // lane) * lane
    pad = Vp - V
    if pad:
        W = jnp.pad(W, ((0, 0), (0, pad)))
        b = jnp.pad(b, ((0, pad),), constant_values=_NEG_BIG)
        pos = jnp.pad(pos, ((0, 0), (0, pad)))
    return (W.astype(jnp.bfloat16),
            b.reshape(1, -1).astype(jnp.float32),
            pos.astype(jnp.float32))


# ----------------------------------------------------------------------------
# Shared in-kernel helpers (traced into each fused kernel; nothing here touches
# HBM -- all intermediates stay in VMEM / vregs).
# ----------------------------------------------------------------------------
def _shifted_logits_and_lse(fc, w, b, pos):
    """Toy "captioning model": linear head + positional bias + log-softmax.

    Returns (z, lse) with z = logits - rowmax, so logprobs = z - lse; callers
    consume z / lse directly and the full log-prob tensor is never stored.
    # TODO(synk): the real self.model is an external autoregressive captioner
    #             (attention decoder, multinomial sampling with sample_max=0);
    #             it has no clean in-kernel equivalent.
    """
    logits = jnp.dot(fc.astype(jnp.bfloat16), w.astype(jnp.bfloat16),
                     preferred_element_type=jnp.float32)          # (N, Vp) MXU
    logits = logits + b                                            # (N, Vp)
    logits = logits[:, None, :] + pos[None, :, :]                  # (N, T, Vp)
    m = jnp.max(logits, axis=-1, keepdims=True)
    z = logits - m
    lse = jnp.log(jnp.sum(jnp.exp(z), axis=-1, keepdims=True))     # (N, T, 1)
    return z, lse


def _greedy_sample(z, lse):
    """Greedy (argmax) sampling + per-token max logprob (first-occurrence ties).
    Padded vocab lanes hold ~-1e30 and can never be selected."""
    Vp = z.shape[-1]
    m2 = jnp.max(z, axis=-1, keepdims=True)                        # (N, T, 1)
    iota = lax.broadcasted_iota(jnp.int32, z.shape, 2)
    gen = jnp.min(jnp.where(z == m2, iota, Vp), axis=-1)           # (N, T) int32
    slp = (m2 - lse)[..., 0]                                       # (N, T) f32
    return gen.astype(jnp.int32), slp


def _seq_mask(seq):
    """mask = cat(ones(N,1), (seq > 0)[:, :-1]) -- RewardCriterion / PPO mask."""
    m = (seq > 0).astype(jnp.float32)
    shifted = pltpu.roll(m, shift=1, axis=1)                       # XLU slot
    col = lax.broadcasted_iota(jnp.int32, m.shape, 1)
    return jnp.where(col == 0, 1.0, shifted)


def _reward_col(gen, gts_sel):
    """get_self_critical_reward stand-in: per-sequence token-match ratio, (N, 1).
    # TODO(synk): real reward is CIDEr over decoded strings (numpy/coco-caption),
    #             not expressible in a TPU kernel.
    """
    match = (gen == gts_sel).astype(jnp.float32)
    return jnp.mean(match, axis=-1, keepdims=True)                 # (N, 1)


def _masked_mean(num_terms, mask):
    """sum(num_terms) / sum(mask) as a (1, 1) tile.
    Precondition: sum(mask) > 0 (mirrors the unguarded torch criteria)."""
    num = jnp.sum(jnp.sum(num_terms, axis=1, keepdims=True), axis=0, keepdims=True)
    den = jnp.sum(jnp.sum(mask, axis=1, keepdims=True), axis=0, keepdims=True)
    return num * pl.reciprocal(den, approx=True)


def _rl_loss(slp, reward_col, mask):
    # utils.RewardCriterion: -sum(logp * reward * mask) / sum(mask);
    # reward_col (N,1) broadcasts in-register -- never materialized as (N,L).
    return _masked_mean(-slp * reward_col * mask, mask)


def _ppo_loss(slp, old_slp, reward_col, mask, clip_eps=0.2):
    # utils.PPORewardCriterion: clipped surrogate objective.
    ratio = jnp.exp(slp - old_slp)
    surr1 = ratio * reward_col
    surr2 = jnp.clip(ratio, 1.0 - clip_eps, 1.0 + clip_eps) * reward_col
    return _masked_mean(-jnp.minimum(surr1, surr2) * mask, mask)


# ----------------------------------------------------------------------------
# Fused kernels: one pallas_call per LossWrapper branch.
# ----------------------------------------------------------------------------
def _xe_fused_kernel(fc_ref, w_ref, b_ref, pos_ref, tgt_ref, msk_ref, loss_ref):
    # model forward + utils.LanguageModelCriterion; log-probs never hit HBM.
    z, lse = _shifted_logits_and_lse(fc_ref[...], w_ref[...], b_ref[...], pos_ref[...])
    tgt = tgt_ref[...]                                             # (N, T) int32
    iota = lax.broadcasted_iota(jnp.int32, z.shape, 2)
    z_tgt = jnp.sum(jnp.where(iota == tgt[:, :, None], z, 0.0),
                    axis=-1, keepdims=True)                        # (N, T, 1)
    nll = (lse - z_tgt)[..., 0]                                    # -logprob[target]
    msk = msk_ref[...]
    loss_ref[...] = _masked_mean(nll * msk, msk)


def _sc_fused_kernel(fc_ref, w_ref, b_ref, pos_ref, gts_ref, loss_ref, rmean_ref):
    # model forward + greedy sample + reward + utils.RewardCriterion.
    z, lse = _shifted_logits_and_lse(fc_ref[...], w_ref[...], b_ref[...], pos_ref[...])
    gen, slp = _greedy_sample(z, lse)
    mask = _seq_mask(gen)
    reward_col = _reward_col(gen, gts_ref[...])                    # (N, 1) in VMEM
    loss_ref[...] = _rl_loss(slp, reward_col, mask)
    # out['reward'] = reward[:, 0].mean()  (reward rows are constant over L)
    rmean_ref[...] = jnp.sum(reward_col, axis=0, keepdims=True) * (1.0 / gen.shape[0])


def _ppo_fused_kernel(fc_ref, w_ref, b_ref, pos_ref, gts_ref, old_ref,
                      loss_ppo_ref, loss_sc_ref, rmean_ref, slp_ref):
    # model forward + greedy sample + reward + PPORewardCriterion + RewardCriterion.
    z, lse = _shifted_logits_and_lse(fc_ref[...], w_ref[...], b_ref[...], pos_ref[...])
    gen, slp = _greedy_sample(z, lse)
    mask = _seq_mask(gen)
    reward_col = _reward_col(gen, gts_ref[...])
    loss_ppo_ref[...] = _ppo_loss(slp, old_ref[...], reward_col, mask)
    loss_sc_ref[...] = _rl_loss(slp, reward_col, mask)
    rmean_ref[...] = jnp.sum(reward_col, axis=0, keepdims=True) * (1.0 / gen.shape[0])
    slp_ref[...] = slp                      # becomes new old_sample_logprobs state


# ----------------------------------------------------------------------------
# Host-side wrappers (single pallas_call each; params are the padded versions).
# ----------------------------------------------------------------------------
def xe_loss(fc_feats, W, b, pos, target, mask):
    out = pl.pallas_call(
        _xe_fused_kernel,
        out_shape=jax.ShapeDtypeStruct((1, 1), jnp.float32),
    )(fc_feats, W, b, pos, target.astype(jnp.int32), mask.astype(jnp.float32))
    return out[0, 0]


def sc_losses(fc_feats, W, b, pos, gts_sel):
    loss, rmean = pl.pallas_call(
        _sc_fused_kernel,
        out_shape=(jax.ShapeDtypeStruct((1, 1), jnp.float32),
                   jax.ShapeDtypeStruct((1, 1), jnp.float32)),
    )(fc_feats, W, b, pos, gts_sel.astype(jnp.int32))
    return loss[0, 0], rmean[0, 0]


def ppo_losses(fc_feats, W, b, pos, gts_sel, old_sample_logprobs):
    N, L = gts_sel.shape
    loss_ppo, loss_sc, rmean, slp = pl.pallas_call(
        _ppo_fused_kernel,
        out_shape=(jax.ShapeDtypeStruct((1, 1), jnp.float32),
                   jax.ShapeDtypeStruct((1, 1), jnp.float32),
                   jax.ShapeDtypeStruct((1, 1), jnp.float32),
                   jax.ShapeDtypeStruct((N, L), jnp.float32)),
    )(fc_feats, W, b, pos, gts_sel.astype(jnp.int32),
      old_sample_logprobs.astype(jnp.float32))
    return loss_ppo[0, 0], loss_sc[0, 0], rmean[0, 0], slp


# ----------------------------------------------------------------------------
# LossWrapper.forward
# ----------------------------------------------------------------------------
def loss_wrapper_forward(params, old_sample_logprobs,
                         fc_feats, att_feats, labels, masks, att_masks,
                         gts, gt_indices, sc_flag, ppo_flag,
                         clipped_lambda, sc_lambda):
    # att_feats / att_masks are consumed by the external attention model,
    # which is outside this wrapper (stand-in model uses fc_feats only).
    W, b, pos = params
    out = {}
    new_old_sample_logprobs = old_sample_logprobs

    if ppo_flag:
        # TODO(synk): at real sizes, fold this row gather into the fused kernel
        #             via PrefetchScalarGridSpec scalar prefetch of gt_indices.
        gts_sel = gts[gt_indices]
        loss_ppo, loss_sc, rmean, sample_logprobs = ppo_losses(
            fc_feats, W, b, pos, gts_sel, old_sample_logprobs)
        new_old_sample_logprobs = sample_logprobs
        print('Using sc_lambda: {}\tclipped_lambda: {}'.format(sc_lambda, clipped_lambda))
        loss = sc_lambda * loss_sc + clipped_lambda * loss_ppo
        out['reward'] = rmean
    elif not sc_flag:
        loss = xe_loss(fc_feats, W, b, pos, labels[:, 1:], masks[:, 1:])
    else:
        gts_sel = gts[gt_indices]
        loss, rmean = sc_losses(fc_feats, W, b, pos, gts_sel)
        out['reward'] = rmean

    out['loss'] = loss
    return out, new_old_sample_logprobs


if __name__ == "__main__":
    key = jax.random.PRNGKey(0)
    k1, k2, k3, k4, k5, k6, k7 = jax.random.split(key, 7)

    N, L, V, D, A = 4, 8, 32, 32, 16   # batch, seq, vocab, feat dim, att regions

    # deterministic "model" parameters (vocab axis padded to 128 lanes once)
    W = jax.random.normal(k1, (D, V), jnp.float32) * 0.1
    b = jax.random.normal(k2, (V,), jnp.float32) * 0.01
    pos = jax.random.normal(k3, (L, V), jnp.float32) * 0.1
    params = pad_vocab_params(W, b, pos)

    # inputs
    fc_feats = jax.random.normal(k4, (N, D), jnp.float32)
    att_feats = jax.random.normal(k5, (N, A, D), jnp.float32)
    labels = jax.random.randint(k6, (N, L + 1), 1, V).astype(jnp.int32)
    masks = jnp.ones((N, L + 1), jnp.float32).at[:, -2:].set(0.0)
    att_masks = jnp.ones((N, A), jnp.float32)
    gts = jax.random.randint(k7, (N, L), 1, V).astype(jnp.int32)
    gt_indices = jnp.arange(N, dtype=jnp.int32)
    old_sample_logprobs = jnp.zeros((N, L), jnp.float32)   # mirrors torch.zeros(50,16)

    # XE branch (sc_flag=False, ppo_flag=False)
    out_xe, _ = loss_wrapper_forward(params, old_sample_logprobs,
                                     fc_feats, att_feats, labels, masks, att_masks,
                                     gts, gt_indices, sc_flag=False, ppo_flag=False,
                                     clipped_lambda=0.5, sc_lambda=1.0)
    jax.block_until_ready(out_xe['loss'])

    # SC branch
    out_sc, _ = loss_wrapper_forward(params, old_sample_logprobs,
                                     fc_feats, att_feats, labels, masks, att_masks,
                                     gts, gt_indices, sc_flag=True, ppo_flag=False,
                                     clipped_lambda=0.5, sc_lambda=1.0)
    jax.block_until_ready(out_sc['loss'])
    jax.block_until_ready(out_sc['reward'])

    # PPO branch (also updates old_sample_logprobs state)
    out_ppo, new_old = loss_wrapper_forward(params, old_sample_logprobs,
                                            fc_feats, att_feats, labels, masks, att_masks,
                                            gts, gt_indices, sc_flag=False, ppo_flag=True,
                                            clipped_lambda=0.5, sc_lambda=1.0)
    jax.block_until_ready(out_ppo['loss'])
    jax.block_until_ready(out_ppo['reward'])
    jax.block_until_ready(new_old)

    print("KERNEL_OK")
</pallas_src>

<mosaic_0001>
module attributes {stable_mosaic.version = 11 : i64} {
  func.func @_xe_fused_kernel(%arg0: memref<4x32xf32, #tpu.memory_space<vmem>>, %arg1: memref<32x128xbf16, #tpu.memory_space<vmem>>, %arg2: memref<1x128xf32, #tpu.memory_space<vmem>>, %arg3: memref<8x128xf32, #tpu.memory_space<vmem>>, %arg4: memref<4x8xi32, #tpu.memory_space<vmem>>, %arg5: memref<4x8xf32, #tpu.memory_space<vmem>>, %arg6: memref<1x1xf32, #tpu.memory_space<vmem>>) attributes {dimension_semantics = [], scalar_prefetch = 0 : i64, scratch_operands = 0 : i64, tpu.core_type = #tpu.core_type<tc>} {
    %c0 = arith.constant 0 : index
    %c0_0 = arith.constant 0 : index
    %0 = vector.load %arg0[%c0, %c0_0] : memref<4x32xf32, #tpu.memory_space<vmem>>, vector<4x32xf32>
    %c0_1 = arith.constant 0 : index
    %c0_2 = arith.constant 0 : index
    %1 = vector.load %arg1[%c0_1, %c0_2] : memref<32x128xbf16, #tpu.memory_space<vmem>>, vector<32x128xbf16>
    %c0_3 = arith.constant 0 : index
    %c0_4 = arith.constant 0 : index
    %2 = vector.load %arg2[%c0_3, %c0_4] : memref<1x128xf32, #tpu.memory_space<vmem>>, vector<1x128xf32>
    %c0_5 = arith.constant 0 : index
    %c0_6 = arith.constant 0 : index
    %3 = vector.load %arg3[%c0_5, %c0_6] : memref<8x128xf32, #tpu.memory_space<vmem>>, vector<8x128xf32>
    %4 = arith.truncf %0 : vector<4x32xf32> to vector<4x32xbf16>
    %cst = arith.constant dense<0.000000e+00> : vector<4x128xf32>
    %5 = tpu.matmul %4, %1, %cst {dimension_numbers = #tpu.dot_dimension_numbers<[1], [0], [0], [1], [0, 0, 1, 1], [], []>} : vector<4x32xbf16>, vector<32x128xbf16>, vector<4x128xf32> -> vector<4x128xf32>
    %6 = vector.broadcast %2 : vector<1x128xf32> to vector<4x128xf32>
    %7 = arith.addf %5, %6 : vector<4x128xf32>
    %8 = vector.shape_cast %7 : vector<4x128xf32> to vector<4x1x128xf32>
    %9 = vector.shape_cast %3 : vector<8x128xf32> to vector<1x8x128xf32>
    %10 = vector.broadcast %8 : vector<4x1x128xf32> to vector<4x8x128xf32>
    %11 = vector.broadcast %9 : vector<1x8x128xf32> to vector<4x8x128xf32>
    %12 = arith.addf %10, %11 : vector<4x8x128xf32>
    %cst_7 = arith.constant dense<0xFF800000> : vector<4x8xf32>
    %13 = vector.multi_reduction <maximumf>, %12, %cst_7 [2] : vector<4x8x128xf32> to vector<4x8xf32>
    %14 = vector.shape_cast %13 : vector<4x8xf32> to vector<4x8x1xf32>
    %15 = vector.broadcast %14 : vector<4x8x1xf32> to vector<4x8x128xf32>
    %16 = arith.subf %12, %15 : vector<4x8x128xf32>
    %17 = math.exp %16 : vector<4x8x128xf32>
    %cst_8 = arith.constant dense<0.000000e+00> : vector<4x8xf32>
    %18 = vector.multi_reduction <add>, %17, %cst_8 [2] : vector<4x8x128xf32> to vector<4x8xf32>
    %19 = vector.shape_cast %18 : vector<4x8xf32> to vector<4x8x1xf32>
    %20 = math.log %19 : vector<4x8x1xf32>
    %c0_9 = arith.constant 0 : index
    %c0_10 = arith.constant 0 : index
    %21 = vector.load %arg4[%c0_9, %c0_10] : memref<4x8xi32, #tpu.memory_space<vmem>>, vector<4x8xi32>
    %22 = tpu.iota {dimensions = array<i32: 2>} : vector<4x8x128xi32>
    %23 = vector.shape_cast %21 : vector<4x8xi32> to vector<4x8x1xi32>
    %24 = vector.broadcast %23 : vector<4x8x1xi32> to vector<4x8x128xi32>
    %25 = arith.cmpi eq, %22, %24 : vector<4x8x128xi32>
    %cst_11 = arith.constant 0.000000e+00 : f32
    %26 = vector.broadcast %cst_11 : f32 to vector<4x8x128xf32>
    %27 = arith.select %25, %16, %26 : vector<4x8x128xi1>, vector<4x8x128xf32>
    %cst_12 = arith.constant dense<0.000000e+00> : vector<4x8xf32>
    %28 = vector.multi_reduction <add>, %27, %cst_12 [2] : vector<4x8x128xf32> to vector<4x8xf32>
    %29 = vector.shape_cast %28 : vector<4x8xf32> to vector<4x8x1xf32>
    %30 = arith.subf %20, %29 : vector<4x8x1xf32>
    %31 = vector.shape_cast %30 : vector<4x8x1xf32> to vector<4x8xf32>
    %c0_13 = arith.constant 0 : index
    %c0_14 = arith.constant 0 : index
    %32 = vector.load %arg5[%c0_13, %c0_14] : memref<4x8xf32, #tpu.memory_space<vmem>>, vector<4x8xf32>
    %33 = arith.mulf %31, %32 : vector<4x8xf32>
    %cst_15 = arith.constant dense<0.000000e+00> : vector<4xf32>
    %34 = vector.multi_reduction <add>, %33, %cst_15 [1] : vector<4x8xf32> to vector<4xf32>
    %35 = vector.shape_cast %34 : vector<4xf32> to vector<4x1xf32>
    %cst_16 = arith.constant dense<0.000000e+00> : vector<1xf32>
    %36 = vector.multi_reduction <add>, %35, %cst_16 [0] : vector<4x1xf32> to vector<1xf32>
    %37 = vector.shape_cast %36 : vector<1xf32> to vector<1x1xf32>
    %cst_17 = arith.constant dense<0.000000e+00> : vector<4xf32>
    %38 = vector.multi_reduction <add>, %32, %cst_17 [1] : vector<4x8xf32> to vector<4xf32>
    %39 = vector.shape_cast %38 : vector<4xf32> to vector<4x1xf32>
    %cst_18 = arith.constant dense<0.000000e+00> : vector<1xf32>
    %40 = vector.multi_reduction <add>, %39, %cst_18 [0] : vector<4x1xf32> to vector<1xf32>
    %41 = vector.shape_cast %40 : vector<1xf32> to vector<1x1xf32>
    %42 = tpu.reciprocal %41 {approx = true} : vector<1x1xf32> -> vector<1x1xf32>
    %43 = arith.mulf %37, %42 : vector<1x1xf32>
    %c0_19 = arith.constant 0 : index
    %c0_20 = arith.constant 0 : index
    %44 = vector.load %arg6[%c0_19, %c0_20] : memref<1x1xf32, #tpu.memory_space<vmem>>, vector<1x1xf32>
    tpu.vector_store %arg6[%c0_19, %c0_20], %43 {strides = array<i32>} : memref<1x1xf32, #tpu.memory_space<vmem>>, vector<1x1xf32>,
    return
  }
}

</mosaic_0001>

<bundles_post_ra>
// kernel: tpu_custom_call.1
= control target key start
LH: loop header
LB: loop body
LE: loop exit
PB: predicated region body
PF: predicated region fallthrough
CT: control target
= control target key end

     0   :  { %11 = vsyncpa [#allocation3], 0  ;;  %s622_s0 = inlined_call_operand.hbm [shape: f32[4,32], index: 0, kind: input, shape index: {}]   ;;  %s623_s1 = inlined_call_operand.hbm [shape: bf16[32,128], index: 1, kind: input, shape index: {}]   ;;  %s624_s2 = inlined_call_operand.vmem [shape: f32[1,128], index: 2, kind: input, shape index: {}]   ;;  %s625_s3 = inlined_call_operand.vmem [shape: f32[8,128], index: 3, kind: input, shape index: {}]   ;;  %s626_s4 = inlined_call_operand.vmem [shape: s32[4,8], index: 4, kind: input, shape index: {}]   ;;  %s627_s5 = inlined_call_operand.vmem [shape: f32[4,8], index: 5, kind: input, shape index: {}]   ;;  %s628_s6 = inlined_call_operand.hbm [shape: f32[1,1], index: 6, kind: output, shape index: {}]  }
   0x1   :  { %12 = vsyncpa [#allocation6], 0 }
   0x2   :  { %13 = vsyncpa [#allocation4], 0  ;;  %s494_s21 = smov [#allocation2]   ;;  %s495_s23 = smov [#allocation5]  }
   0x3   :  { %s20_s22 = sshll.u32 %s494_s21, 4  ;;  %s29_s24 = sshll.u32 %s495_s23, 4  ;;  %s21_s22 = int_to_ptr.vmem [resolvable:$true] %s20_s22  ;;  %s538_s24 = int_to_ptr.vmem [resolvable:$true] %s29_s24 }
   0x4   :  { %s422_s27 = scalar_lea.hbm %s622_s0, 64 }
   0x5   :  { %p423_p0 = scmp.ne.s32.totalorder %s622_s0, %s422_s27  ;;  %p426_p1 = scmp.lt.u32.totalorder %s422_s27, %s622_s0 }
   0x7   :  { %p428_p2 = pnand %p426_p1, %p423_p0 }
   0x9   :  { %431 = shalt.err (!%p428_p2)
}
   0xa   :  { %s432_s8 = scalar_lea.vmem %s21_s22, 64  ;;  %p437_p4 = scmp.lt.s32.totalorder %s21_s22, %s21_s22 }
   0xb   :  { %p433_p3 = scmp.ne.s32.totalorder %s21_s22, %s432_s8  ;;  %p438_p5 = scmp.lt.s32.totalorder %s432_s8, %s432_s8 }
   0xd   :  { %p439_p6 = por %p438_p5, %p437_p4 }
   0xf   :  { %p440_p7 = pnand %p439_p6, %p433_p3 }
  0x11   :  { %443 = shalt.err (!%p440_p7)
}
  0x12   :  { %23 = dma.hbm_to_vmem [thread:$0]  %s622_s0, 64, %s21_s22, [#allocation3]  }
  0x13   :  { %s444_s13 = scalar_lea.hbm %s623_s1, 256 }
  0x14   :  { %p445_p8 = scmp.ne.s32.totalorder %s623_s1, %s444_s13  ;;  %p448_p9 = scmp.lt.u32.totalorder %s444_s13, %s623_s1 }
  0x16   :  { %p450_p10 = pnand %p448_p9, %p445_p8 }
  0x18   :  { %453 = shalt.err (!%p450_p10)
}
  0x19   :  { %s454_s18 = scalar_lea.vmem %s538_s24, 256  ;;  %p459_p12 = scmp.lt.s32.totalorder %s538_s24, %s538_s24 }
  0x1a   :  { %p455_p11 = scmp.ne.s32.totalorder %s538_s24, %s454_s18  ;;  %p460_p13 = scmp.lt.s32.totalorder %s454_s18, %s454_s18 }
  0x1c   :  { %p461_p0 = por %p460_p13, %p459_p12 }
  0x1e   :  { %p462_p1 = pnand %p461_p0, %p455_p11 }
  0x20   :  { %465 = shalt.err (!%p462_p1)
}
  0x21   :  { %s496_s0 = smov 64   ;;  %s497_s19 = smov 4  }
  0x22   :  { %35 = dma.hbm_to_vmem [thread:$0]  %s623_s1, 256, %s538_s24, [#allocation6], %s496_s0, %s496_s0, %s497_s19  }
  0x23   :  { %488 = dma.done.wait [#allocation3], 64  }
  0x24   :  { %489 = vsyncadd [#allocation3], 4294967232 }
  0x25   :  { %490 = dma.done.wait [#allocation6], 256  }
  0x26   :  { %491 = vsyncadd [#allocation6], 4294967040  ;;  %v125_v0 = vlaneseq  ;;  %v498_v1 = vmov 0.0   ;;  %vm499_vm0 = vmmov 0   ;;  %v402_v4 = vld [vmem:[#allocation5] sm:$0xff]   ;;  %v403_v5 = vld [vmem:[#allocation5 + $0x8] sm:$0xff]  }
  0x27   :  { %383 = vmatprep.subr.bf16.mxu0 %v498_v1  ;;  %387 = vmatprep.mubr.msk.bf16.mxu0 %vm499_vm0, %v498_v1  ;;  %v51_v6 = vld [vmem:[#allocation2] sm:$0xf]  ;;  %v206_v7 = vld [vmem:[%s626_s4] sm:$0xf]  ;;  %vm77_vm1 = vcmask 261120   ;;  %vm334_vm6 = vcmask 60416  }
  0x28   :  { %v569_v2 = vshrl.u32 %v125_v0, 7  ;;  %384 = vmatpush3.bf16.msra.mxu0 %v402_v4  ;;  %v58_v9 = vpack.c.bf16 %v51_v6, %v51_v6  ;;  %v500_v10 = vmov 1966171168   ;;  %v376_v13 = vld [vmem:[%s624_s2] ss:$0 sm:$0xff]  ;;  %v594_v44 = vand.u32 127, %v125_v0 }
  0x29   :  { %385 = vmatprep.subr.bf16.mxu0 %v498_v1  ;;  %v123_v11 = vunpack.c.l.s4 %v500_v10  ;;  %v57_v24 = vld [vmem:[%s625_s3] sm:$0xff]  ;;  %vm327_vm7 = vcmask 1041409   ;;  %vm329_vm8 = vcmask 1042434   ;;  %vm331_vm9 = vcmask 1043459  }
  0x2a   :  { %v218_v3 = vsub.s32 1, %v569_v2  ;;  %v582_v21 = vsub.s32 0, %v569_v2  ;;  %v225_v36 = vsub.s32 2, %v569_v2  ;;  %v232_v38 = vsub.s32 3, %v569_v2  ;;  %v257_v4 = vld [vmem:[%s627_s5] sm:$0xf] }
  0x2b   :  { %v124_v12 = vunpack.c.0.s8 %v123_v11  ;;  %vm338_vm10 = vcmask 1043456   ;;  %s502_s5 = smov [#allocation7]   ;;  %vm358_vm11 = vcmask 0  }
  0x2c   :  { %v219_v8 = vrot.slane %v206_v7, %v218_v3  ;;  %386 = vmatpush3.bf16.msra.mxu0 %v403_v5  ;;  %v226_v37 = vrot.slane %v206_v7, %v225_v36  ;;  %v212_v39 = vrot.slane %v206_v7, %v582_v21  ;;  %v233_v40 = vrot.slane %v206_v7, %v232_v38  ;;  %s366_s26 = sshll.u32 %s502_s5, 4  ;;  %s367_s26 = int_to_ptr.vmem [resolvable:$true] %s366_s26 }
  0x2d   :  { %v127_v14 = vsub.s32 %v124_v12, %v569_v2  ;;  %v269_v5 = vrot.slane %v257_v4, %v218_v3  ;;  %v276_v6 = vrot.slane %v257_v4, %v225_v36  ;;  %v283_v7 = vrot.slane %v257_v4, %v232_v38  ;;  %s466_s27 = scalar_lea.vmem %s367_s26, 16  ;;  %s470_s28 = scalar_lea.vmem %s367_s26, 32 }
  0x2e   :  { %221 = vbcast.lane.b32.xlu1 %v219_v8, 256  ;;  %v262_v8 = vrot.slane %v257_v4, %v582_v21  ;;  %v313_v38 = vsub.s32 %v594_v44, %v569_v2  ;;  %p467_p2 = scmp.ne.s32.totalorder %s367_s26, %s466_s27  ;;  %p471_p3 = scmp.lt.s32.totalorder %s367_s26, %s367_s26 }
  0x2f   :  { %388 = vmatmul.mubr.msk.bf16.vlgmr.msra.gmra.mrb[0].mxu0 %vm77_vm1, %v58_v9  ;;  %v501_v9 = vmov 0   ;;  %p472_p4 = scmp.lt.s32.totalorder %s470_s28, %s466_s27 }
  0x30   :  { %401 = vset.pattern.permute.xlu1 %v501_v9  ;;  %400 = vset.pattern.permute.xlu0 %v501_v9 }
  0x31   :  { %p473_p5 = por %p472_p4, %p471_p3 }
  0x33   :  { %p474_p6 = pnand %p473_p5, %p467_p2 }
  0xa0   :  { %v222_v41 = vpop.permute.xlu1 %221 }
  0xa1   :  { %vm238_vm2 = vcmp.eq.s32.totalorder %v594_v44, %v222_v41 }
 0x102   :  { %v115_v15 = vpop.f32.mrb[0].mxu0 }
 0x103   :  { %v116_v16 = vadd.f32 %v376_v13, %v115_v15  ;;  %v389_v17 = vpop.f32.mrb[1].mxu0 }
 0x104   :  { %v118_v18 = vpop.f32.mrb[2].mxu0 }
 0x105   :  { %v128_v19 = vrot.slane %v116_v16, %v127_v14  ;;  %v390_v20 = vpop.f32.mrb[3].mxu0 }
 0x107   :  { %v129_v22 = vcombine.high %v128_v19, %v128_v19  ;;  %v136_v23 = vrot.slane %v128_v19, %v127_v14 }
 0x109   :  { %v149_v25 = vrot.slane %v136_v23, %v582_v21  ;;  %v144_v26 = vcombine.high %v136_v23, %v136_v23  ;;  %v143_v27 = vrot.slane %v129_v22, %v127_v14 }
 0x10b   :  { %v166_v28 = vadd.f32 %v149_v25, %v57_v24  ;;  %v157_v29 = vrot.slane %v144_v26, %v582_v21  ;;  %v153_v30 = vrot.slane %v143_v27, %v582_v21  ;;  %v145_v31 = vcombine.high %v143_v27, %v143_v27 }
 0x10d   :  { %170 = vmax.xlane.f32.xlu0 %v166_v28  ;;  %v168_v32 = vadd.f32 %v157_v29, %v57_v24  ;;  %v161_v33 = vrot.slane %v145_v31, %v582_v21  ;;  %v167_v34 = vadd.f32 %v153_v30, %v57_v24 }
 0x10f   :  { %174 = vmax.xlane.f32.xlu1 %v168_v32  ;;  %v169_v35 = vadd.f32 %v161_v33, %v57_v24 }
 0x111   :  { %172 = vmax.xlane.f32.xlu0 %v167_v34 }
 0x113   :  { %176 = vmax.xlane.f32.xlu1 %v169_v35 }
 0x124   :  { %228 = vbcast.lane.b32.xlu1 %v226_v37, 256  ;;  %v346_v37 = vsel %vm334_vm6, %v257_v4, 0.0 }
 0x127   :  { %214 = vbcast.lane.b32.xlu0 %v212_v39, 256 }
 0x128   :  { %235 = vbcast.lane.b32.xlu1 %v233_v40, 256 }
 0x19a   :  { %v171_v42 = vpop.xlane.xlu0 %170 }
 0x19b   :  { %v178_v43 = vsub.f32 %v166_v28, %v171_v42 }
 0x19c   :  { %v175_v45 = vpop.xlane.xlu1 %174 }
 0x19d   :  { %v182_v46 = vmul.f32 1.442695, %v178_v43  ;;  %v180_v47 = vsub.f32 %v168_v32, %v175_v45 }
 0x19e   :  { %v173_v48 = vpop.xlane.xlu0 %172 }
 0x19f   :  { %v179_v49 = vsub.f32 %v167_v34, %v173_v48  ;;  %404 = vpow2.f32 %v182_v46  ;;  %v186_v53 = vmul.f32 1.442695, %v180_v47 }
 0x1a0   :  { %v177_v50 = vpop.xlane.xlu1 %176 }
 0x1a1   :  { %v184_v51 = vmul.f32 1.442695, %v179_v49  ;;  %v242_v52 = vsel %vm238_vm2, %v179_v49, 0.0  ;;  %v181_v54 = vsub.f32 %v169_v35, %v177_v50 }
 0x1a2   :  { %v215_v55 = vpop.permute.xlu0 %214  ;;  %247 = vadd.xlane.f32.xlu1 %v242_v52 }
 0x1a3   :  { %406 = vpow2.f32 %v184_v51  ;;  %vm237_vm3 = vcmp.eq.s32.totalorder %v594_v44, %v215_v55  ;;  %v188_v58 = vmul.f32 1.442695, %v181_v54 }
 0x1a4   :  { %v229_v56 = vpop.permute.xlu1 %228  ;;  %v241_v57 = vsel %vm237_vm3, %v178_v43, 0.0  ;;  %408 = vpow2.f32 %v186_v53 }
 0x1a5   :  { %vm239_vm4 = vcmp.eq.s32.totalorder %v594_v44, %v229_v56  ;;  %245 = vadd.xlane.f32.xlu0 %v241_v57  ;;  %410 = vpow2.f32 %v188_v58 }
 0x1a6   :  { %v243_v60 = vsel %vm239_vm4, %v180_v47, 0.0 }
 0x1a8   :  { %v236_v59 = vpop.permute.xlu1 %235 }
 0x1a9   :  { %vm240_vm5 = vcmp.eq.s32.totalorder %v594_v44, %v236_v59  ;;  %249 = vadd.xlane.f32.xlu0 %v243_v60  ;;  %v405_v62 = vpop.eup %404 }
 0x1aa   :  { %v244_v61 = vsel %vm240_vm5, %v181_v54, 0.0 }
 0x1ab   :  { %251 = vadd.xlane.f32.xlu1 %v244_v61 }
 0x1ad   :  { %v407_v63 = vpop.eup %406  ;;  %190 = vadd.xlane.f32.xlu0 %v405_v62 }
 0x1ae   :  { %v409_v0 = vpop.eup %408 }
 0x1af   :  { %192 = vadd.xlane.f32.xlu1 %v407_v63  ;;  %v411_v1 = vpop.eup %410 }
 0x1b1   :  { %194 = vadd.xlane.f32.xlu0 %v409_v0 }
 0x1b5   :  { %196 = vadd.xlane.f32.xlu0 %v411_v1 }
 0x1c0   :  { %271 = vbcast.lane.b32.xlu1 %v269_v5, 256 }
 0x1c4   :  { %278 = vbcast.lane.b32.xlu1 %v276_v6, 256 }
 0x1c8   :  { %285 = vbcast.lane.b32.xlu1 %v283_v7, 256 }
 0x1cb   :  { %264 = vbcast.lane.b32.xlu0 %v262_v8, 256 }
 0x22f   :  { %v248_v11 = vpop.xlane.xlu1 %247 }
 0x232   :  { %v246_v10 = vpop.xlane.xlu0 %245 }
 0x236   :  { %v250_v12 = vpop.xlane.xlu0 %249 }
 0x238   :  { %v252_v13 = vpop.xlane.xlu1 %251 }
 0x23a   :  { %v191_v14 = vpop.xlane.xlu0 %190 }
 0x23b   :  { %412 = vlog2.f32 %v191_v14 }
 0x23c   :  { %v193_v15 = vpop.xlane.xlu1 %192 }
 0x23d   :  { %414 = vlog2.f32 %v193_v15 }
 0x23e   :  { %v195_v3 = vpop.xlane.xlu0 %194 }
 0x23f   :  { %416 = vlog2.f32 %v195_v3 }
 0x240   :  { %v272_v17 = vpop.permute.xlu1 %271 }
 0x242   :  { %v197_v16 = vpop.xlane.xlu0 %196 }
 0x243   :  { %418 = vlog2.f32 %v197_v16 }
 0x244   :  { %v279_v25 = vpop.permute.xlu1 %278 }
 0x245   :  { %v413_v18 = vpop.eup %412 }
 0x246   :  { %v199_v19 = vmul.f32 0.6931472, %v413_v18  ;;  %v265_v21 = vpop.permute.xlu0 %264 }
 0x247   :  { %v415_v20 = vpop.eup %414 }
 0x248   :  { %v201_v22 = vmul.f32 0.6931472, %v415_v20  ;;  %v253_v23 = vsub.f32 %v199_v19, %v246_v10  ;;  %v286_v33 = vpop.permute.xlu1 %285 }
 0x249   :  { %v417_v24 = vpop.eup %416 }
 0x24a   :  { %v203_v26 = vmul.f32 0.6931472, %v417_v24  ;;  %v291_v27 = vmul.f32 %v265_v21, %v253_v23  ;;  %v254_v28 = vsub.f32 %v201_v22, %v248_v11 }
 0x24c   :  { %v292_v29 = vmul.f32 %v272_v17, %v254_v28  ;;  %300 = vperm.xlu0 %400, %v291_v27   ;;  %v255_v30 = vsub.f32 %v203_v26, %v250_v12 }
 0x24d   :  { %v419_v31 = vpop.eup %418 }
 0x24e   :  { %v205_v32 = vmul.f32 0.6931472, %v419_v31  ;;  %303 = vperm.xlu1 %401, %v292_v29   ;;  %v293_v34 = vmul.f32 %v279_v25, %v255_v30 }
 0x250   :  { %v256_v35 = vsub.f32 %v205_v32, %v252_v13 }
 0x252   :  { %v294_v36 = vmul.f32 %v286_v33, %v256_v35  ;;  %306 = vperm.xlu1 %401, %v293_v34  }
 0x254   :  { %309 = vperm.xlu0 %400, %v294_v36  }
 0x276   :  { %347 = vadd.xlane.f32.xlu1 %v346_v37 }
 0x2cb   :  { %v301_v40 = vpop.permute.xlu0 %300 }
 0x2cc   :  { %v314_v42 = vrot.slane %v301_v40, %v313_v38 }
 0x2cd   :  { %v304_v39 = vpop.permute.xlu1 %303 }
 0x2ce   :  { %v318_v41 = vrot.slane %v304_v39, %v313_v38 }
 0x2d0   :  { %v328_v46 = vsel %vm327_vm7, %v318_v41, %v314_v42 }
 0x2d1   :  { %v307_v43 = vpop.permute.xlu1 %306 }
 0x2d2   :  { %v322_v45 = vrot.slane %v307_v43, %v313_v38 }
 0x2d3   :  { %v310_v47 = vpop.permute.xlu0 %309 }
 0x2d4   :  { %v326_v48 = vrot.slane %v310_v47, %v313_v38  ;;  %v330_v49 = vsel %vm329_vm8, %v322_v45, %v328_v46 }
 0x2d6   :  { %v332_v50 = vsel %vm331_vm9, %v326_v48, %v330_v49 }
 0x2d7   :  { %v335_v51 = vsel %vm334_vm6, %v332_v50, 0.0 }
 0x2d8   :  { %336 = vadd.xlane.f32.xlu0 %v335_v51 }
 0x303   :  { %v348_v52 = vpop.xlane.xlu1 %347 }
 0x304   :  { %v349_v2 = vsel %vm338_vm10, %v348_v52, 0.0 }
 0x305   :  { %v350_v44 = vrot.slane %v349_v2, 4 }
 0x307   :  { %v351_v53 = vadd.f32 %v350_v44, %v349_v2 }
 0x309   :  { %v352_v54 = vrot.slane %v351_v53, 2 }
 0x30b   :  { %v353_v55 = vadd.f32 %v352_v54, %v351_v53 }
 0x30d   :  { %v354_v56 = vrot.slane %v353_v55, 1 }
 0x30f   :  { %v355_v57 = vadd.f32 %v354_v56, %v353_v55 }
 0x311   :  { %420 = vrcp.f32 %v355_v57 }
 0x31b   :  { %v421_v4 = vpop.eup %420 }
 0x365   :  { %v337_v58 = vpop.xlane.xlu0 %336 }
 0x366   :  { %v339_v59 = vsel %vm338_vm10, %v337_v58, 0.0 }
 0x367   :  { %v340_v60 = vrot.slane %v339_v59, 4 }
 0x369   :  { %v341_v61 = vadd.f32 %v340_v60, %v339_v59 }
 0x36b   :  { %v342_v62 = vrot.slane %v341_v61, 2 }
 0x36d   :  { %v343_v63 = vadd.f32 %v342_v62, %v341_v61 }
 0x36f   :  { %v344_v0 = vrot.slane %v343_v63, 1 }
 0x371   :  { %v345_v1 = vadd.f32 %v344_v0, %v343_v63 }
 0x373   :  { %v357_v5 = vmul.f32 %v421_v4, %v345_v1 }
 0x375   :  { %359 = vst.msk [vmem:[#allocation7] sm:$0x1] %vm358_vm11, %v357_v5 }
 0x376   :  { %477 = shalt.err (!%p474_p6)
}
 0x377   :  { %s478_s7 = scalar_lea.hbm %s628_s6, 16 }
 0x378   :  { %p479_p7 = scmp.ne.s32.totalorder %s628_s6, %s478_s7  ;;  %p482_p8 = scmp.lt.u32.totalorder %s478_s7, %s628_s6 }
 0x37a   :  { %p484_p9 = pnand %p482_p8, %p479_p7 }
 0x37c   :  { %487 = shalt.err (!%p484_p9)
}
 0x37d   :  { %369 = dma.vmem_to_hbm [thread:$0]  %s367_s26, 16, %s628_s6, [#allocation4]  }
 0x37e   :  { %492 = dma.done.wait [#allocation4], 16  }
 0x37f   :  { %493 = vsyncadd [#allocation4], 4294967280 }
 0x380   :  { %373 = vsyncpa [#allocation3], 1 }
 0x381   :  { %374 = vsyncpa [#allocation6], 1 }
 0x382   :  { %375 = vsyncpa [#allocation4], 1 }

</bundles_post_ra>
